<compile_context>
chip_gen: v5e
topology: v5e:2x2
jax: 0.10.0
libtpu: 0.0.40
codegen_flags: <defaults>
</compile_context>

<pallas_src>
import jax
import jax.numpy as jnp
import numpy as np
from jax.experimental import pallas as pl
from jax.experimental.pallas import tpu as pltpu

KERNEL_SIZES = (2, 3, 5)
KMAX = max(KERNEL_SIZES)


def _round_up(x, m):
    return ((x + m - 1) // m) * m


def _pick_batch_tile(B, L, E, C, vmem_budget=40 * 1024 * 1024, max_tile=1024):
    """Largest batch tile (multiple of 8) whose working set fits the budget."""
    c3 = 3 * C
    per_b = (2 * L * KMAX * E * 2      # double-buffered bf16 im2col input
             + 2 * L * c3 * 4          # f32 activations + mask/select headroom
             + 2 * c3 * 4)             # pooled / fc temporaries
    tb = max(8, min(max_tile, (vmem_budget // per_b) // 8 * 8))
    b8 = _round_up(B, 8)
    if tb >= b8:
        # whole batch fits one tile: split into >=2 grid steps when possible
        # so v7x's two TensorCores both get work.
        tb = max(8, _round_up(b8 // 2, 8)) if b8 >= 16 else b8
    return min(tb, b8)


def ngrams_kernel(x_ref, w_ref, b_ref, wfc_ref, bfc_ref, out_ref):
    # x_ref  : (TB*L, 5*E)  bf16  im2col'd embedding windows for this batch tile
    # w_ref  : (5*E, 3*C)   bf16  all three convs fused (zero rows = unused taps)
    # b_ref  : (1, 3*C)     f32   conv biases [b1|b2|b3]
    # wfc_ref: (1, 3*C)     f32   fc weight row
    # bfc_ref: (1, 1)       f32   fc bias (SMEM scalar)
    # out_ref: (1, 1, TB)   f32   sigmoid probabilities, lane-dense
    TB = out_ref.shape[-1]
    L = x_ref.shape[0] // TB
    C3 = b_ref.shape[-1]
    C = C3 // len(KERNEL_SIZES)

    # One MXU matmul covering every tap of every n-gram conv (f32 accumulate).
    acts = jnp.dot(x_ref[...], w_ref[...],
                   preferred_element_type=jnp.float32)          # (TB*L, 3C)
    acts = jnp.maximum(acts + b_ref[...], 0.0)                  # bias + ReLU
    acts = acts.reshape(TB, L, C3)

    # Mask trailing invalid time positions per n-gram size.  Post-ReLU the
    # values are >= 0, so masking to 0 is the identity for the max-pool.
    t_idx = jax.lax.broadcasted_iota(jnp.int32, (1, L, C3), 1)
    c_idx = jax.lax.broadcasted_iota(jnp.int32, (1, L, C3), 2)
    limit = jnp.where(
        c_idx < C, L - KERNEL_SIZES[0],
        jnp.where(c_idx < 2 * C, L - KERNEL_SIZES[1], L - KERNEL_SIZES[2]))
    acts = jnp.where(t_idx <= limit, acts, 0.0)

    pooled = jnp.max(acts, axis=1)                              # (TB, 3C)

    # fc as a VPU/XLU lane-reduce against the (1, 3C) weight row, then sigmoid,
    # stored as a lane-dense (1, 1, TB) row.
    logit = bfc_ref[0, 0] + jnp.sum(pooled * wfc_ref[...],
                                    axis=-1, keepdims=True)     # (TB, 1)
    out_ref[...] = jax.nn.sigmoid(logit).reshape(1, 1, TB)


def ngrams_forward(emb_table, x_ids, w1, b1, w2, b2, w3, b3, wfc, bfc,
                   *, batch_tile=None):
    """emb_table: (V, E) f32, x_ids: (B, L) int32. Returns (B,) f32 probs."""
    B, L = x_ids.shape
    E = emb_table.shape[1]
    C = w1.shape[-1]
    assert L >= KMAX, "sequence length must be >= largest n-gram"
    K = KMAX * E
    C3 = 3 * C

    # --- batch tiling ---------------------------------------------------
    if batch_tile is None:
        tb = _pick_batch_tile(B, L, E, C)
    else:
        tb = min(_round_up(max(batch_tile, 1), 8), _round_up(B, 8))
    Bp = _round_up(B, tb)
    grid = Bp // tb

    # --- im2col gather in bf16 (pad folded into the same producer) ------
    x_ids_p = x_ids if Bp == B else jnp.pad(x_ids, ((0, Bp - B), (0, 0)))
    win = jnp.minimum(jnp.arange(L)[:, None] + jnp.arange(KMAX)[None, :],
                      L - 1)                                     # (L, KMAX)
    ids_win = x_ids_p[:, win]                                    # (Bp, L, KMAX)
    table_bf16 = emb_table.astype(jnp.bfloat16)
    x2d = table_bf16[ids_win].reshape(Bp * L, K)                 # (Bp*L, 5E)

    # --- fused conv weight (5E, 3C), zero rows for unused taps ----------
    def col_block(w):
        k = w.shape[0]                                           # (k, E, C)
        return jnp.pad(w.reshape(k * E, C), ((0, (KMAX - k) * E), (0, 0)))

    w_all = jnp.concatenate([col_block(w1), col_block(w2), col_block(w3)],
                            axis=1).astype(jnp.bfloat16)         # (5E, 3C)
    b_all = jnp.concatenate([b1, b2, b3], axis=1).astype(jnp.float32)  # (1,3C)
    wfc_row = wfc.reshape(1, C3).astype(jnp.float32)                   # (1,3C)
    bfc2 = bfc.reshape(1, 1).astype(jnp.float32)

    out = pl.pallas_call(
        ngrams_kernel,
        out_shape=jax.ShapeDtypeStruct((grid, 1, tb), jnp.float32),
        grid_spec=pltpu.PrefetchScalarGridSpec(
            num_scalar_prefetch=0,
            grid=(grid,),
            in_specs=[
                pl.BlockSpec((tb * L, K), lambda i: (i, 0)),     # im2col tile
                pl.BlockSpec((K, C3), lambda i: (0, 0)),         # fused conv W
                pl.BlockSpec((1, C3), lambda i: (0, 0)),         # conv biases
                pl.BlockSpec((1, C3), lambda i: (0, 0)),         # fc weight row
                pl.BlockSpec(memory_space=pltpu.MemorySpace.SMEM),  # fc bias
            ],
            out_specs=pl.BlockSpec((1, 1, tb), lambda i: (i, 0, 0)),
        ),
        compiler_params=pltpu.CompilerParams(
            dimension_semantics=("parallel",),
            vmem_limit_bytes=48 * 1024 * 1024,
        ),
    )(x2d, w_all, b_all, wfc_row, bfc2)
    return out.reshape(Bp)[:B]                 # == squeeze(1) in the torch code


if __name__ == "__main__":
    # Small, self-consistent shapes: vocab=20, seq len=8, embed=32, channels=64
    B, L, E, C, V = 16, 8, 32, 64, 20
    key = jax.random.PRNGKey(0)
    k_emb, k_x, k1, k2, k3, kfc = jax.random.split(key, 6)

    # frozen pretrained-style embedding table + integer token ids
    emb_table = jax.random.normal(k_emb, (V, E), jnp.float32)
    x_ids = jax.random.randint(k_x, (B, L), 0, V)

    def conv_init(k, ksz):
        kw, kb = jax.random.split(k)
        bound = 1.0 / np.sqrt(ksz * E)         # PyTorch Conv2d default-ish init
        w = jax.random.uniform(kw, (ksz, E, C), jnp.float32, -bound, bound)
        b = jax.random.uniform(kb, (1, C), jnp.float32, -bound, bound)
        return w, b

    w1, b1 = conv_init(k1, KERNEL_SIZES[0])
    w2, b2 = conv_init(k2, KERNEL_SIZES[1])
    w3, b3 = conv_init(k3, KERNEL_SIZES[2])

    kfw, kfb = jax.random.split(kfc)
    fbound = 1.0 / np.sqrt(3 * C)
    wfc = jax.random.uniform(kfw, (3 * C, 1), jnp.float32, -fbound, fbound)
    bfc = jax.random.uniform(kfb, (1, 1), jnp.float32, -fbound, fbound)

    out = ngrams_forward(emb_table, x_ids, w1, b1, w2, b2, w3, b3, wfc, bfc)
    out = jax.block_until_ready(out)
    assert out.shape == (B,)

    # Pure-JAX (f32) reference for sanity checking the kernel.
    def reference():
        emb = jnp.take(emb_table, x_ids, axis=0)          # (B, L, E) f32
        feats = []
        for (w, b) in ((w1, b1), (w2, b2), (w3, b3)):
            ksz = w.shape[0]
            Lout = L - ksz + 1
            s = jnp.zeros((B, Lout, C), jnp.float32)
            for j in range(ksz):
                s = s + jnp.einsum('ble,ec->blc', emb[:, j:j + Lout, :], w[j])
            s = jax.nn.relu(s + b)
            feats.append(jnp.max(s, axis=1))
        f = jnp.concatenate(feats, axis=1)
        return jax.nn.sigmoid(f @ wfc + bfc)[:, 0]

    ref_out = jax.block_until_ready(reference())
    # bf16 matmul inputs (f32 accumulate) -> small tolerance vs f32 reference.
    assert np.allclose(np.asarray(out), np.asarray(ref_out), atol=1e-2), (
        np.asarray(out), np.asarray(ref_out))

    print("KERNEL_OK")
</pallas_src>

<mosaic_0001>
module attributes {stable_mosaic.version = 11 : i64} {
  func.func @ngrams_kernel(%arg0: i32, %arg1: memref<64x160xbf16, #tpu.memory_space<vmem>>, %arg2: memref<160x192xbf16, #tpu.memory_space<vmem>>, %arg3: memref<1x192xf32, #tpu.memory_space<vmem>>, %arg4: memref<1x192xf32, #tpu.memory_space<vmem>>, %arg5: memref<1x1xf32, #tpu.memory_space<smem>>, %arg6: memref<1x1x8xf32, #tpu.memory_space<vmem>>) attributes {dimension_semantics = [#tpu.dimension_semantics<parallel>], iteration_bounds = array<i64: 2>, scalar_prefetch = 0 : i64, scratch_operands = 0 : i64, tpu.core_type = #tpu.core_type<tc>, window_params = [{transform_indices = @transform_0, window_bounds = array<i64: 64, 160>}, {pipeline_mode = #tpu.pipeline_mode<synchronous>, transform_indices = @transform_1, window_bounds = array<i64: 160, 192>}, {pipeline_mode = #tpu.pipeline_mode<synchronous>, transform_indices = @transform_2, window_bounds = array<i64: 1, 192>}, {pipeline_mode = #tpu.pipeline_mode<synchronous>, transform_indices = @transform_3, window_bounds = array<i64: 1, 192>}, {transform_indices = @transform_4, window_bounds = array<i64: 1, 1>}, {transform_indices = @transform_5, window_bounds = array<i64: 1, 1, 8>}]} {
    %c0 = arith.constant 0 : index
    %c0_0 = arith.constant 0 : index
    %0 = vector.load %arg1[%c0, %c0_0] : memref<64x160xbf16, #tpu.memory_space<vmem>>, vector<64x160xbf16>
    %c0_1 = arith.constant 0 : index
    %c0_2 = arith.constant 0 : index
    %1 = vector.load %arg2[%c0_1, %c0_2] : memref<160x192xbf16, #tpu.memory_space<vmem>>, vector<160x192xbf16>
    %cst = arith.constant dense<0.000000e+00> : vector<64x192xf32>
    %2 = tpu.matmul %0, %1, %cst {dimension_numbers = #tpu.dot_dimension_numbers<[1], [0], [0], [1], [0, 0, 1, 1], [], []>} : vector<64x160xbf16>, vector<160x192xbf16>, vector<64x192xf32> -> vector<64x192xf32>
    %c0_3 = arith.constant 0 : index
    %c0_4 = arith.constant 0 : index
    %3 = vector.load %arg3[%c0_3, %c0_4] : memref<1x192xf32, #tpu.memory_space<vmem>>, vector<1x192xf32>
    %4 = vector.broadcast %3 : vector<1x192xf32> to vector<64x192xf32>
    %5 = arith.addf %2, %4 : vector<64x192xf32>
    %cst_5 = arith.constant 0.000000e+00 : f32
    %6 = vector.broadcast %cst_5 : f32 to vector<64x192xf32>
    %7 = arith.maximumf %5, %6 : vector<64x192xf32>
    %8 = vector.shape_cast %7 : vector<64x192xf32> to vector<8x8x192xf32>
    %9 = tpu.iota {dimensions = array<i32: 1>} : vector<1x8x192xi32>
    %10 = tpu.iota {dimensions = array<i32: 2>} : vector<1x8x192xi32>
    %c64_i32 = arith.constant 64 : i32
    %11 = vector.broadcast %c64_i32 : i32 to vector<1x8x192xi32>
    %12 = arith.cmpi slt, %10, %11 : vector<1x8x192xi32>
    %c128_i32 = arith.constant 128 : i32
    %13 = vector.broadcast %c128_i32 : i32 to vector<1x8x192xi32>
    %14 = arith.cmpi slt, %10, %13 : vector<1x8x192xi32>
    %c5_i32 = arith.constant 5 : i32
    %c3_i32 = arith.constant 3 : i32
    %15 = vector.broadcast %c5_i32 : i32 to vector<1x8x192xi32>
    %16 = vector.broadcast %c3_i32 : i32 to vector<1x8x192xi32>
    %17 = arith.select %14, %15, %16 : vector<1x8x192xi1>, vector<1x8x192xi32>
    %c6_i32 = arith.constant 6 : i32
    %18 = vector.broadcast %c6_i32 : i32 to vector<1x8x192xi32>
    %19 = arith.select %12, %18, %17 : vector<1x8x192xi1>, vector<1x8x192xi32>
    %20 = arith.cmpi sle, %9, %19 : vector<1x8x192xi32>
    %cst_6 = arith.constant 0.000000e+00 : f32
    %21 = vector.shape_cast %20 : vector<1x8x192xi1> to vector<1x8x192xi1>
    %22 = vector.broadcast %21 : vector<1x8x192xi1> to vector<8x8x192xi1>
    %23 = vector.broadcast %cst_6 : f32 to vector<8x8x192xf32>
    %24 = arith.select %22, %8, %23 : vector<8x8x192xi1>, vector<8x8x192xf32>
    %cst_7 = arith.constant dense<0xFF800000> : vector<8x192xf32>
    %25 = vector.multi_reduction <maximumf>, %24, %cst_7 [1] : vector<8x8x192xf32> to vector<8x192xf32>
    %c0_8 = arith.constant 0 : index
    %c0_9 = arith.constant 0 : index
    %26 = memref.load %arg5[%c0_8, %c0_9] : memref<1x1xf32, #tpu.memory_space<smem>>
    %c0_10 = arith.constant 0 : index
    %c0_11 = arith.constant 0 : index
    %27 = vector.load %arg4[%c0_10, %c0_11] : memref<1x192xf32, #tpu.memory_space<vmem>>, vector<1x192xf32>
    %28 = vector.broadcast %27 : vector<1x192xf32> to vector<8x192xf32>
    %29 = arith.mulf %25, %28 : vector<8x192xf32>
    %cst_12 = arith.constant dense<0.000000e+00> : vector<8xf32>
    %30 = vector.multi_reduction <add>, %29, %cst_12 [1] : vector<8x192xf32> to vector<8xf32>
    %31 = vector.shape_cast %30 : vector<8xf32> to vector<8x1xf32>
    %32 = vector.broadcast %26 : f32 to vector<8x1xf32>
    %33 = arith.addf %32, %31 : vector<8x1xf32>
    %34 = arith.negf %33 : vector<8x1xf32>
    %35 = math.exp %34 : vector<8x1xf32>
    %cst_13 = arith.constant 1.000000e+00 : f32
    %36 = vector.broadcast %cst_13 : f32 to vector<8x1xf32>
    %37 = arith.addf %36, %35 : vector<8x1xf32>
    %38 = arith.divf %36, %37 : vector<8x1xf32>
    %39 = vector.shape_cast %38 : vector<8x1xf32> to vector<1x1x8xf32>
    %c0_14 = arith.constant 0 : index
    %c0_15 = arith.constant 0 : index
    %c0_16 = arith.constant 0 : index
    %40 = vector.load %arg6[%c0_14, %c0_15, %c0_16] : memref<1x1x8xf32, #tpu.memory_space<vmem>>, vector<1x1x8xf32>
    tpu.vector_store %arg6[%c0_14, %c0_15, %c0_16], %39 {strides = array<i32>} : memref<1x1x8xf32, #tpu.memory_space<vmem>>, vector<1x1x8xf32>,
    return
  }
  func.func @transform_0(%arg0: i32) -> (i32, i32) {
    %c0_i32 = arith.constant 0 : i32
    %c0_i32_0 = arith.constant 0 : i32
    return %arg0, %c0_i32 : i32, i32
  }
  func.func @transform_1(%arg0: i32) -> (i32, i32) {
    %c0_i32 = arith.constant 0 : i32
    %c0_i32_0 = arith.constant 0 : i32
    %c0_i32_1 = arith.constant 0 : i32
    return %c0_i32, %c0_i32_0 : i32, i32
  }
  func.func @transform_2(%arg0: i32) -> (i32, i32) {
    %c0_i32 = arith.constant 0 : i32
    %c0_i32_0 = arith.constant 0 : i32
    %c0_i32_1 = arith.constant 0 : i32
    return %c0_i32, %c0_i32_0 : i32, i32
  }
  func.func @transform_3(%arg0: i32) -> (i32, i32) {
    %c0_i32 = arith.constant 0 : i32
    %c0_i32_0 = arith.constant 0 : i32
    %c0_i32_1 = arith.constant 0 : i32
    return %c0_i32, %c0_i32_0 : i32, i32
  }
  func.func @transform_4(%arg0: i32) -> (i32, i32) {
    %c0_i32 = arith.constant 0 : i32
    %c0_i32_0 = arith.constant 0 : i32
    %c0_i32_1 = arith.constant 0 : i32
    return %c0_i32, %c0_i32_0 : i32, i32
  }
  func.func @transform_5(%arg0: i32) -> (i32, i32, i32) {
    %c0_i32 = arith.constant 0 : i32
    %c0_i32_0 = arith.constant 0 : i32
    %c0_i32_1 = arith.constant 0 : i32
    return %arg0, %c0_i32, %c0_i32_0 : i32, i32, i32
  }
}

</mosaic_0001>

<bundles_post_ra>
// kernel: tpu_custom_call.1
= control target key start
LH: loop header
LB: loop body
LE: loop exit
PB: predicated region body
PF: predicated region fallthrough
CT: control target
= control target key end

     0   :  { %s1505_s0 = inlined_call_operand.vmem [shape: bf16[128,160], index: 0, kind: input, shape index: {}]   ;;  %s1506_s1 = inlined_call_operand.vmem [shape: bf16[160,192], index: 1, kind: input, shape index: {}]   ;;  %s1507_s2 = inlined_call_operand.vmem [shape: f32[1,192], index: 2, kind: input, shape index: {}]   ;;  %s1508_s3 = inlined_call_operand.vmem [shape: f32[1,192], index: 3, kind: input, shape index: {}]   ;;  %s1509_s4 = inlined_call_operand.<no memory space> [shape: f32[1,1], index: 4, kind: input, shape index: {}]   ;;  %s1510_s5 = inlined_call_operand.hbm [shape: f32[2,1,8], index: 5, kind: output, shape index: {}]  }
   0x1   :  { %10 = sst [smem:[#allocation2]] %s1509_s4 }
   0x2   :  { %11 = vsyncpa [#allocation4], 0 }
   0x3   :  { %13 = vsyncpa [#allocation4 + $0x1], 0  ;;  %s1159_s20 = smov 0   ;;  %s1161_s21 = smov 0  }
   0x4   :  { %s1163_s22 = smov 0   ;;  %s1165_s23 = smov 0  }
   0x5 LB: > { %s1180_s4 = sadd.s32 4294967295, %s1123_s23   ;;  %s858_s24 = sadd.s32 4294967294, %s1123_s23   ;;  %s1123_s23 = sphi %s1165_s23, %s1518_s23   ;;  %s1119_s22 = sphi %s1163_s22, %s1517_s22   ;;  %s1115_s21 = sphi %s1161_s21, %s1516_s21   ;;  %s1111_s20 = sphi %s1159_s20, %s1515_s20  }
   0x6   : > { %s1184_s25 = sadd.s32 1, %s1123_s23   ;;  %s136_s26 = sadd.s32 1, %s1119_s22 }
   0x7   : > { %s133_s27 = ssub.s32 %s1123_s23, %s1184_s25  ;;  %p146_p0 = scmp.ne.s32.totalorder %s1119_s22, %s1115_s21 }
   0x8   : > { %p134_p1 = scmp.eq.s32.totalorder %s133_s27, 0  ;;  %p147_p2 = scmp.eq.s32.totalorder %s1180_s4, 1 }
   0x9   : > { %p152_p3 = scmp.ne.s32.totalorder %s1115_s21, %s1111_s20  ;;  %p153_p4 = scmp.eq.s32.totalorder %s858_s24, 1 }
   0xa   : > { %s1195_s28 = scalar_select %p134_p1, %s1119_s22, %s136_s26  }
   0xb   : > { %p1197_p5 = por %p147_p2, %p146_p0  ;;  %p1201_p6 = por %p153_p4, %p152_p3 }
   0xc   : > { %p861_p7 = scmp.ge.s32.totalorder %s1123_s23, 1  ;;  %p193_p8 = scmp.lt.s32.totalorder %s1123_s23, 3 }
   0xe   : > { %p194_p9 = pnand %p861_p7, %p193_p8 }
   0xf   : > { %s862_s12 = sshll.u32 (!%p194_p9), %s1180_s4, 3  ;;  %s684_s10 = sld [smem:[#allocation2]] (!%p194_p9) }
  0x10   : > { %197 = sbr.rel (%p194_p9) target bundleno = 423 (0x1a7), region = 40  ;;  %p222_p10 = scmp.lt.s32.totalorder (!%p194_p9), %s862_s12, 15 }
  0x11   : > { %s219_s11 = sand.u32 (!%p194_p9), 1, %s1115_s21   ;;  %s1081_s6 = scalar_lea.hbm (!%p194_p9), %s1510_s5, 2 }
  0x12   : > { %s220_s16 = scalar_lea.vmem (!%p194_p9), [#allocation3], %s219_s11  ;;  %s791_s19 = scalar_lea.sflag (!%p194_p9), [#allocation4], %s219_s11 }
  0x13   : > { %s801_s17 = sshll.u32 (!%p194_p9), %s220_s16, 4  ;;  %s802_s17 = int_to_ptr.vmem [resolvable:$true] %s801_s17 }
  0x15   : > { %v955_v0 = vld [vmem:[%s1506_s1 + $0x70] sm:$0xf]  ;;  %v1012_v1 = vld [vmem:[%s1506_s1 + $0x74] sm:$0xf0]  ;;  %v1011_v2 = vld [vmem:[%s1506_s1 + $0x74] sm:$0xf] }
  0x16   : > { %v956_v3 = vor.u32 %v1012_v1, %v955_v0  ;;  %v957_v4 = vld [vmem:[%s1506_s1 + $0x78] sm:$0xf0]  ;;  %v947_v5 = vld [vmem:[%s1506_s1 + $0x60] sm:$0xf]  ;;  %v1010_v6 = vld [vmem:[%s1506_s1 + $0x64] sm:$0xf0] }
  0x17   : > { %v960_v7 = vor.u32 %v1011_v2, %v957_v4  ;;  %v1009_v8 = vld [vmem:[%s1506_s1 + $0x64] sm:$0xf]  ;;  %v949_v9 = vld [vmem:[%s1506_s1 + $0x68] sm:$0xf0]  ;;  %v948_v10 = vor.u32 %v1010_v6, %v947_v5  ;;  %v939_v12 = vld [vmem:[%s1506_s1 + $0x50] sm:$0xf] }
  0x18   : > { %412 = vmatpush.bf16.msra.mxu0 %v956_v3  ;;  %v952_v11 = vor.u32 %v1009_v8, %v949_v9  ;;  %v1008_v13 = vld [vmem:[%s1506_s1 + $0x54] sm:$0xf0]  ;;  %v1007_v14 = vld [vmem:[%s1506_s1 + $0x54] sm:$0xf]  ;;  %v941_v15 = vld [vmem:[%s1506_s1 + $0x58] sm:$0xf0] }
  0x19   : > { %470 = vmatpush.bf16.msra.mxu2 %v960_v7  ;;  %v1015_v16 = vld [vmem:[%s1506_s1 + $0x94] sm:$0xf]  ;;  %v940_v17 = vor.u32 %v1008_v13, %v939_v12  ;;  %v973_v18 = vld [vmem:[%s1506_s1 + $0x98] sm:$0xf0]  ;;  %v944_v19 = vor.u32 %v1007_v14, %v941_v15  ;;  %v931_v20 = vld [vmem:[%s1506_s1 + $0x40] sm:$0xf] }
  0x1a   : > { %v1006_v21 = vld [vmem:[%s1506_s1 + $0x44] sm:$0xf0]  ;;  %v976_v22 = vor.u32 %v1015_v16, %v973_v18  ;;  %v1013_v23 = vld [vmem:[%s1506_s1 + $0x84] sm:$0xf]  ;;  %v933_v25 = vld [vmem:[%s1506_s1 + $0x48] sm:$0xf0] }
  0x1b   : > { %v1005_v24 = vld [vmem:[%s1506_s1 + $0x44] sm:$0xf]  ;;  %v965_v26 = vld [vmem:[%s1506_s1 + $0x88] sm:$0xf0]  ;;  %v932_v28 = vor.u32 %v1006_v21, %v931_v20  ;;  %v971_v29 = vld [vmem:[%s1506_s1 + $0x90] sm:$0xf] }
  0x1c   : > { %413 = vmatpush.bf16.msra.mxu0 %v948_v10  ;;  %505 = vmatpush.bf16.msra.mxu3 %v976_v22  ;;  %v968_v27 = vor.u32 %v1013_v23, %v965_v26  ;;  %v1016_v30 = vld [vmem:[%s1506_s1 + $0x94] sm:$0xf0]  ;;  %v936_v31 = vor.u32 %v1005_v24, %v933_v25  ;;  %v923_v32 = vld [vmem:[%s1506_s1 + $0x30] sm:$0xf]  ;;  %v1003_v34 = vld [vmem:[%s1506_s1 + $0x34] sm:$0xf]  ;;  %v544_v26 = vlaneseq }
  0x1d   : > { %471 = vmatpush.bf16.msra.mxu2 %v952_v11  ;;  %v1004_v33 = vld [vmem:[%s1506_s1 + $0x34] sm:$0xf0]  ;;  %v972_v35 = vor.u32 %v1016_v30, %v971_v29  ;;  %v925_v36 = vld [vmem:[%s1506_s1 + $0x38] sm:$0xf0]  ;;  %s1520_s12 = smov (!%p222_p10, %s862_s12), 15  ;;  %vm399_vm0 = vcmask 261120  }
  0x1e   : > { %v963_v37 = vld [vmem:[%s1506_s1 + $0x80] sm:$0xf]  ;;  %v1014_v38 = vld [vmem:[%s1506_s1 + $0x84] sm:$0xf0]  ;;  %v924_v39 = vor.u32 %v1004_v33, %v923_v32  ;;  %s988_s15 = sshll.u32 %s1520_s12, 3  ;;  %v928_v42 = vor.u32 %v1003_v34, %v925_v36  ;;  %v1366_v36 = vshrl.u32 %v544_v26, 7 }
  0x1f   : > { %447 = vmatpush.bf16.msra.mxu1 %v972_v35  ;;  %v915_v40 = vld [vmem:[%s1506_s1 + $0x20] sm:$0xf]  ;;  %v964_v41 = vor.u32 %v1014_v38, %v963_v37  ;;  %v1002_v43 = vld [vmem:[%s1506_s1 + $0x24] sm:$0xf0]  ;;  %v1001_v44 = vld [vmem:[%s1506_s1 + $0x24] sm:$0xf]  ;;  %s1307_s7 = scalar_lea.vmem %s1505_s0, %s988_s15  ;;  %s799_s15 = scalar_lea.hbm %s1510_s5, %s1180_s4 }
  0x20   : > { %414 = vmatpush.bf16.msra.mxu0 %v940_v17  ;;  %506 = vmatpush.bf16.msra.mxu3 %v968_v27  ;;  %v917_v45 = vld [vmem:[%s1506_s1 + $0x28] sm:$0xf0]  ;;  %v989_v46 = vld [vmem:[%s1307_s7 + $0x4] sm:$0xf]  ;;  %v916_v49 = vor.u32 %v1002_v43, %v915_v40  ;;  %v907_v51 = vld [vmem:[%s1506_s1 + $0x10] sm:$0xf] }
  0x21   : > { %472 = vmatpush.bf16.msra.mxu2 %v944_v19  ;;  %v869_v47 = vld [vmem:[%s1307_s7 + $0x8] sm:$0xf0]  ;;  %v920_v50 = vor.u32 %v1001_v44, %v917_v45  ;;  %v1000_v52 = vld [vmem:[%s1506_s1 + $0x14] sm:$0xf0]  ;;  %v999_v53 = vld [vmem:[%s1506_s1 + $0x14] sm:$0xf] }
  0x22   : > { %v872_v48 = vor.u32 %v989_v46, %v869_v47  ;;  %v909_v54 = vld [vmem:[%s1506_s1 + $0x18] sm:$0xf0]  ;;  %v908_v55 = vor.u32 %v1000_v52, %v907_v51  ;;  %v899_v57 = vld [vmem:[%s1506_s1] sm:$0xf]  ;;  %v998_v58 = vld [vmem:[%s1506_s1 + $0x4] sm:$0xf0] }
  0x23   : > { %448 = vmatpush.bf16.msra.mxu1 %v964_v41  ;;  %v912_v56 = vor.u32 %v999_v53, %v909_v54  ;;  %v997_v59 = vld [vmem:[%s1506_s1 + $0x4] sm:$0xf]  ;;  %v901_v60 = vld [vmem:[%s1506_s1 + $0x8] sm:$0xf0]  ;;  %v900_v61 = vor.u32 %v998_v58, %v899_v57  ;;  %v867_v62 = vld [vmem:[%s1307_s7] sm:$0xf] }
  0x24   : > { %415 = vmatpush.bf16.msra.mxu0 %v932_v28  ;;  %981 = vmatmul.msk.bf16.vlgmr.msra.gmra.mxu3 %vm399_vm0, %v872_v48  ;;  %v990_v63 = vld [vmem:[%s1307_s7 + $0x4] sm:$0xf0]  ;;  %v904_v0 = vor.u32 %v997_v59, %v901_v60  ;;  %v991_v1 = vld [vmem:[%s1307_s7 + $0x14] sm:$0xf]  ;;  %v877_v2 = vld [vmem:[%s1307_s7 + $0x18] sm:$0xf0] }
  0x25   : > { %473 = vmatpush.bf16.msra.mxu2 %v936_v31  ;;  %v868_v3 = vor.u32 %v990_v63, %v867_v62  ;;  %v880_v4 = vor.u32 %v991_v1, %v877_v2  ;;  %v875_v5 = vld [vmem:[%s1307_s7 + $0x10] sm:$0xf]  ;;  %v992_v6 = vld [vmem:[%s1307_s7 + $0x14] sm:$0xf0]  ;;  %v993_v7 = vld [vmem:[%s1307_s7 + $0x24] sm:$0xf] }
  0x26   : > { %977 = vmatmul.msk.bf16.vlgmr.msra.gmra.mxu1 %vm399_vm0, %v872_v48  ;;  %v885_v8 = vld [vmem:[%s1307_s7 + $0x28] sm:$0xf0]  ;;  %v876_v9 = vor.u32 %v992_v6, %v875_v5  ;;  %v883_v11 = vld [vmem:[%s1307_s7 + $0x20] sm:$0xf]  ;;  %v994_v12 = vld [vmem:[%s1307_s7 + $0x24] sm:$0xf0] }
  0x27   : > { %v888_v10 = vor.u32 %v993_v7, %v885_v8  ;;  %v995_v13 = vld [vmem:[%s1307_s7 + $0x34] sm:$0xf]  ;;  %v893_v14 = vld [vmem:[%s1307_s7 + $0x38] sm:$0xf0]  ;;  %v884_v15 = vor.u32 %v994_v12, %v883_v11  ;;  %v891_v17 = vld [vmem:[%s1307_s7 + $0x30] sm:$0xf] }
  0x28   : > { %416 = vmatpush.bf16.msra.mxu0 %v924_v39  ;;  %v896_v16 = vor.u32 %v995_v13, %v893_v14  ;;  %v996_v18 = vld [vmem:[%s1307_s7 + $0x34] sm:$0xf0]  ;;  %v257_v24 = vld [vmem:[%s1507_s2] sm:$0x3]  ;;  %v1362_v31 = vand.u32 127, %v544_v26  ;;  %v1125_v39 = vmov 5  }
  0x29   : > { %474 = vmatpush.bf16.msra.mxu2 %v928_v42  ;;  %v892_v19 = vor.u32 %v996_v18, %v891_v17  ;;  %v1360_v28 = vperm.slane %v257_v24, 0  ;;  %v1368_v42 = vperm.slane %v257_v24, 1  ;;  %vm558_vm3 = vcmp.le.s32.totalorder %v1366_v36, 3  ;;  %s803_s18 = sshll.u32 %s799_s15, 4  ;;  %s804_s18 = int_to_ptr.hbm [resolvable:$true] %s803_s18 }
  0x2a   : > { %vm549_vm1 = vcmp.lt.s32.totalorder %v1362_v31, 64  ;;  %vm585_vm4 = vcmask 523264   ;;  %vm724_vm5 = vcmask 1041409   ;;  %vm727_vm6 = vcmask 1042434   ;;  %s1075_s24 = sshra.s32 %s804_s18, 4  ;;  %s1076_s24 = int_to_ptr.hbm [resolvable:$true] %s1075_s24 }
  0x2b   : > { %v555_v40 = vsel %vm549_vm1, 6, %v1125_v39  ;;  %vm730_vm7 = vcmask 1043459   ;;  %vm733_vm8 = vcmask 1044484   ;;  %vm736_vm9 = vcmask 1045509   ;;  %s1077_s4 = scalar_lea.hbm %s1076_s24, 1  ;;  %p1082_p0 = scmp.lt.s32.totalorder %s1076_s24, %s1510_s5 }
  0x2c   : > { %417 = vmatpush.bf16.msra.mxu0 %v916_v49  ;;  %vm1371_vm2 = vcmp.le.s32.totalorder %v1366_v36, %v555_v40  ;;  %vm739_vm10 = vcmask 1046534   ;;  %vm742_vm11 = vcmask 1047559   ;;  %p1078_p11 = scmp.ne.s32.totalorder %s1076_s24, %s1077_s4  ;;  %p1083_p1 = scmp.lt.s32.totalorder %s1081_s6, %s1077_s4 }
  0x2d   : > { %475 = vmatpush.bf16.msra.mxu2 %v920_v50 }
  0x2e   : > { %p1079_p12 = pnand %p1078_p11, %p1197_p5  ;;  %p1084_p2 = por %p1083_p1, %p1082_p0 }
  0x30   : > { %418 = vmatpush.bf16.msra.mxu0 %v908_v55  ;;  %p1080_p13 = pneg %p1079_p12 }
  0x31   : > { %476 = vmatpush.bf16.msra.mxu2 %v912_v56 }
  0x32   : > { %p1085_p3 = pnand %p1084_p2, %p1080_p13 }
  0x34   : > { %419 = vmatpush.bf16.msra.mxu0 %v900_v61  ;;  %982 = vmatmul.msk.bf16.gmra.mxu3 %vm399_vm0, %v880_v4 }
  0x35   : > { %477 = vmatpush.bf16.msra.mxu2 %v904_v0 }
  0x36   : > { %978 = vmatmul.msk.bf16.gmra.mxu1 %vm399_vm0, %v880_v4 }
  0x37   : > { %420 = vmatmul.bf16.vlgmr.msra.gmra.mxu0 %v868_v3 }
  0x38   : > { %478 = vmatmul.bf16.vlgmr.msra.gmra.mxu2 %v868_v3 }
  0x44   : > { %983 = vmatmul.msk.bf16.gmra.mxu3 %vm399_vm0, %v888_v10 }
  0x46   : > { %979 = vmatmul.msk.bf16.gmra.mxu1 %vm399_vm0, %v888_v10 }
  0x47   : > { %425 = vmatmul.bf16.gmra.mxu0 %v876_v9 }
  0x48   : > { %483 = vmatmul.bf16.gmra.mxu2 %v876_v9 }
  0x54   : > { %984 = vmatmul.msk.bf16.gmra.mxu3 %vm399_vm0, %v896_v16 }
  0x56   : > { %980 = vmatmul.msk.bf16.gmra.mxu1 %vm399_vm0, %v896_v16  ;;  %vm788_vm0 = vcmask 57344  }
  0x57   : > { %430 = vmatmul.bf16.gmra.mxu0 %v884_v15 }
  0x58   : > { %488 = vmatmul.bf16.gmra.mxu2 %v884_v15 }
  0x67   : > { %435 = vmatmul.bf16.gmra.mxu0 %v892_v19 }
  0x68   : > { %493 = vmatmul.bf16.gmra.mxu2 %v892_v19  ;;  %v685_v19 = vld [vmem:[%s1508_s3] sm:$0x3] }
  0xa3   : > { %v450_v20 = vpop.f32.mrf.mxu1 }
  0xa7   : > { %v508_v21 = vpop.f32.mrf.mxu3 }
  0xab   : > { %v452_v22 = vpop.f32.mrf.mxu1 }
  0xaf   : > { %v510_v25 = vpop.f32.mrf.mxu3 }
  0xb3   : > { %v455_v27 = vpop.f32.mrf.mxu1 }
  0xb4   : > { %v421_v23 = vpop.f32.mrf.mxu0 }
  0xb5   : > { %v422_v32 = vadd.f32 %v421_v23, %v1360_v28 }
  0xb7   : > { %v451_v33 = vadd.f32 %v450_v20, %v422_v32  ;;  %v513_v35 = vpop.f32.mrf.mxu3  ;;  %v1398_v32 = vperm.slane %v685_v19, 0 }
  0xb9   : > { %v528_v41 = vmax.f32 %v451_v33, 0.0 }
  0xbb   : > { %v479_v29 = vpop.f32.mrf.mxu2  ;;  %v457_v38 = vpop.f32.mrf.mxu1  ;;  %v563_v44 = vsel %vm1371_vm2, %v528_v41, 0.0 }
  0xbc   : > { %v423_v30 = vpop.f32.mrf.mxu0  ;;  %v480_v45 = vadd.f32 %v479_v29, %v1368_v42  ;;  %v579_v50 = vrot.slane %v563_v44, 4 }
  0xbd   : > { %v424_v48 = vadd.f32 %v423_v30, %v1360_v28 }
  0xbe   : > { %v509_v52 = vadd.f32 %v508_v21, %v480_v45  ;;  %v580_v54 = vmax.f32 %v563_v44, %v579_v50 }
  0xbf   : > { %v515_v49 = vpop.f32.mrf.mxu3  ;;  %v453_v53 = vadd.f32 %v452_v22, %v424_v48 }
  0xc0   : > { %v529_v55 = vmax.f32 %v509_v52, 0.0  ;;  %v581_v60 = vrot.slane %v580_v54, 2 }
  0xc1   : > { %v530_v59 = vmax.f32 %v453_v53, 0.0 }
  0xc2   : > { %v564_v62 = vsel %vm558_vm3, %v529_v55, 0.0  ;;  %v582_v5 = vmax.f32 %v580_v54, %v581_v60 }
  0xc3   : > { %v481_v34 = vpop.f32.mrf.mxu2  ;;  %v460_v51 = vpop.f32.mrf.mxu1  ;;  %v565_v4 = vsel %vm1371_vm2, %v530_v59, 0.0  ;;  %v586_v6 = vsel %vm585_vm4, %v564_v62, -inf }
  0xc4   : > { %v426_v37 = vpop.f32.mrf.mxu0  ;;  %v482_v56 = vadd.f32 %v481_v34, %v1368_v42  ;;  %v593_v13 = vrot.slane %v565_v4, 4  ;;  %v583_v18 = vrot.slane %v582_v5, 1  ;;  %v587_v20 = vrot.slane %v586_v6, 4 }
  0xc5   : > { %v427_v0 = vadd.f32 %v426_v37, %v1360_v28  ;;  %v1400_v37 = vperm.slane %v685_v19, 1 }
  0xc6   : > { %v511_v63 = vadd.f32 %v510_v25, %v482_v56  ;;  %v588_v44 = vmax.f32 %v586_v6, %v587_v20 }
  0xc7   : > { %v518_v2 = vpop.f32.mrf.mxu3  ;;  %v456_v9 = vadd.f32 %v455_v27, %v427_v0  ;;  %v594_v27 = vmax.f32 %v565_v4, %v593_v13 }
  0xc8   : > { %v531_v8 = vmax.f32 %v511_v63, 0.0 }
  0xc9   : > { %v532_v24 = vmax.f32 %v456_v9, 0.0  ;;  %v595_v48 = vrot.slane %v594_v27, 2 }
  0xca   : > { %v566_v23 = vsel %vm558_vm3, %v531_v8, 0.0 }
  0xcb   : > { %v484_v46 = vpop.f32.mrf.mxu2  ;;  %v462_v3 = vpop.f32.mrf.mxu1  ;;  %v599_v39 = vsel %vm585_vm4, %v566_v23, -inf }
  0xcc   : > { %v428_v47 = vpop.f32.mrf.mxu0  ;;  %v485_v61 = vadd.f32 %v484_v46, %v1368_v42  ;;  %v600_v53 = vrot.slane %v599_v39, 4 }
  0xcd   : > { %v429_v10 = vadd.f32 %v428_v47, %v1360_v28 }
  0xce   : > { %v514_v7 = vadd.f32 %v513_v35, %v485_v61  ;;  %v584_v35 = vmax.f32 %v582_v5, %v583_v18  ;;  %v589_v61 = vrot.slane %v588_v44, 2  ;;  %v601_v5 = vmax.f32 %v599_v39, %v600_v53 }
  0xcf   : > { %v458_v25 = vadd.f32 %v457_v38, %v429_v10  ;;  %v520_v33 = vpop.f32.mrf.mxu3  ;;  %v567_v38 = vsel %vm1371_vm2, %v532_v24, 0.0 }
  0xd0   : > { %v533_v21 = vmax.f32 %v514_v7, 0.0  ;;  %v1427_v13 = vmax.f32 %v588_v44, %v589_v61 }
  0xd1   : > { %v534_v45 = vmax.f32 %v458_v25, 0.0 }
  0xd2   : > { %v568_v40 = vsel %vm558_vm3, %v533_v21, 0.0 }
  0xd3   : > { %v486_v57 = vpop.f32.mrf.mxu2  ;;  %v465_v41 = vpop.f32.mrf.mxu1  ;;  %v612_v54 = vsel %vm585_vm4, %v568_v40, -inf  ;;  %v569_v62 = vsel %vm1371_vm2, %v534_v45, 0.0 }
  0xd4   : > { %v431_v58 = vpop.f32.mrf.mxu0  ;;  %v487_v1 = vadd.f32 %v486_v57, %v1368_v42  ;;  %v1415_v57 = vmul.f32 %v1398_v32, %v584_v35  ;;  %v619_v10 = vrot.slane %v569_v62, 4 }
  0xd5   : > { %v432_v14 = vadd.f32 %v431_v58, %v1360_v28  ;;  %v606_v58 = vrot.slane %v567_v38, 4 }
  0xd6   : > { %v516_v11 = vadd.f32 %v515_v49, %v487_v1  ;;  %v596_v1 = vmax.f32 %v594_v27, %v595_v48 }
  0xd7   : > { %v461_v29 = vadd.f32 %v460_v51, %v432_v14  ;;  %v607_v9 = vmax.f32 %v567_v38, %v606_v58  ;;  %v591_v38 = vrot.slane %v1427_v13, 1 }
  0xd8   : > { %v535_v26 = vmax.f32 %v516_v11, 0.0  ;;  %v597_v19 = vrot.slane %v596_v1, 1 }
  0xd9   : > { %v536_v49 = vmax.f32 %v461_v29, 0.0 }
  0xda   : > { %v570_v46 = vsel %vm558_vm3, %v535_v26, 0.0  ;;  %v598_v45 = vmax.f32 %v596_v1, %v597_v19 }
  0xdb   : > { %v489_v12 = vpop.f32.mrf.mxu2  ;;  %v625_v59 = vsel %vm585_vm4, %v570_v46, -inf  ;;  %v467_v24 = vpop.f32.mrf.mxu1 }
  0xdc   : > { %v490_v15 = vadd.f32 %v489_v12, %v1368_v42  ;;  %v433_v16 = vpop.f32.mrf.mxu0  ;;  %v626_v6 = vrot.slane %v625_v59, 4 }
  0xdd   : > { %v434_v17 = vadd.f32 %v433_v16, %v1360_v28  ;;  %v523_v16 = vpop.f32.mrf.mxu3 }
  0xde   : > { %v519_v22 = vadd.f32 %v518_v2, %v490_v15  ;;  %v613_v2 = vrot.slane %v612_v54, 4  ;;  %v627_v25 = vmax.f32 %v625_v59, %v626_v6 }
  0xdf   : > { %v463_v34 = vadd.f32 %v462_v3, %v434_v17  ;;  %v571_v3 = vsel %vm1371_vm2, %v536_v49, 0.0 }
  0xe0   : > { %v537_v30 = vmax.f32 %v519_v22, 0.0  ;;  %v632_v14 = vrot.slane %v571_v3, 4  ;;  %v614_v20 = vmax.f32 %v612_v54, %v613_v2  ;;  %v628_v48 = vrot.slane %v627_v25, 2 }
  0xe1   : > { %v538_v55 = vmax.f32 %v463_v34, 0.0  ;;  %v620_v34 = vmax.f32 %v569_v62, %v619_v10 }
  0xe2   : > { %v572_v50 = vsel %vm558_vm3, %v537_v30, 0.0  ;;  %v602_v30 = vrot.slane %v601_v5, 2  ;;  %v633_v39 = vmax.f32 %v571_v3, %v632_v14  ;;  %v615_v46 = vrot.slane %v614_v20, 2 }
  0xe3   : > { %v491_v47 = vpop.f32.mrf.mxu2  ;;  %v638_v63 = vsel %vm585_vm4, %v572_v50, -inf  ;;  %v573_v7 = vsel %vm1371_vm2, %v538_v55, 0.0  ;;  %v629_v1 = vmax.f32 %v627_v25, %v628_v48 }
  0xe4   : > { %v492_v51 = vadd.f32 %v491_v47, %v1368_v42  ;;  %v436_v52 = vpop.f32.mrf.mxu0  ;;  %v639_v11 = vrot.slane %v638_v63, 4  ;;  %v645_v21 = vrot.slane %v573_v7, 4  ;;  %v634_v55 = vrot.slane %v633_v39, 2 }
  0xe5   : > { %v437_v56 = vadd.f32 %v436_v52, %v1360_v28  ;;  %v603_v52 = vmax.f32 %v601_v5, %v602_v30  ;;  %v616_v61 = vmax.f32 %v614_v20, %v615_v46  ;;  %v693_v46 = vmul.f32 %v1398_v32, %v598_v45 }
  0xe6   : > { %v521_v60 = vadd.f32 %v520_v33, %v492_v51  ;;  %v608_v33 = vrot.slane %v607_v9, 2  ;;  %v640_v35 = vmax.f32 %v638_v63, %v639_v11  ;;  %v646_v47 = vmax.f32 %v573_v7, %v645_v21 }
  0xe7   : > { %v466_v0 = vadd.f32 %v465_v41, %v437_v56  ;;  %v604_v5 = vrot.slane %v603_v52, 1  ;;  %v635_v10 = vmax.f32 %v633_v39, %v634_v55 }
  0xe8   : > { %v539_v4 = vmax.f32 %v521_v60, 0.0  ;;  %v609_v53 = vmax.f32 %v607_v9, %v608_v33  ;;  %v641_v54 = vrot.slane %v640_v35, 2  ;;  %v647_v62 = vrot.slane %v646_v47, 2 }
  0xe9   : > { %v540_v8 = vmax.f32 %v466_v0, 0.0  ;;  %v636_v25 = vrot.slane %v635_v10, 1 }
  0xea   : > { %v574_v12 = vsel %vm558_vm3, %v539_v4, 0.0  ;;  %v642_v7 = vmax.f32 %v640_v35, %v641_v54  ;;  %v610_v14 = vrot.slane %v609_v53, 1 }
  0xeb   : > { %v651_v15 = vsel %vm585_vm4, %v574_v12, -inf  ;;  %v575_v17 = vsel %vm1371_vm2, %v540_v8, 0.0  ;;  %v494_v18 = vpop.f32.mrf.mxu2  ;;  %v525_v8 = vpop.f32.mrf.mxu3  ;;  %v637_v36 = vmax.f32 %v635_v10, %v636_v25 }
  0xec   : > { %v652_v22 = vrot.slane %v651_v15, 4  ;;  %v438_v23 = vpop.f32.mrf.mxu0  ;;  %v658_v26 = vrot.slane %v575_v17, 4  ;;  %v495_v27 = vadd.f32 %v494_v18, %v1368_v42  ;;  %v630_v18 = vrot.slane %v629_v1, 1 }
  0xed   : > { %v439_v29 = vadd.f32 %v438_v23, %v1360_v28  ;;  %v621_v28 = vrot.slane %v620_v34, 2  ;;  %v611_v30 = vmax.f32 %v609_v53, %v610_v14  ;;  %v592_v53 = vmax.f32 %v1427_v13, %v591_v38 }
  0xee   : > { %v653_v40 = vmax.f32 %v651_v15, %v652_v22  ;;  %v524_v41 = vadd.f32 %v523_v16, %v495_v27  ;;  %v659_v49 = vmax.f32 %v575_v17, %v658_v26  ;;  %v617_v15 = vrot.slane %v616_v61, 1 }
  0xef   : > { %v468_v44 = vadd.f32 %v467_v24, %v439_v29  ;;  %v622_v6 = vmax.f32 %v620_v34, %v621_v28  ;;  %v648_v16 = vmax.f32 %v646_v47, %v647_v62  ;;  %v605_v22 = vmax.f32 %v603_v52, %v604_v5 }
  0xf0   : > { %v541_v50 = vmax.f32 %v524_v41, 0.0  ;;  %v654_v56 = vrot.slane %v653_v40, 2  ;;  %v660_v2 = vrot.slane %v659_v49, 2  ;;  %v618_v33 = vmax.f32 %v616_v61, %v617_v15 }
  0xf1   : > { %v542_v51 = vmax.f32 %v468_v44, 0.0  ;;  %v623_v23 = vrot.slane %v622_v6, 1  ;;  %v649_v34 = vrot.slane %v648_v16, 1  ;;  %v631_v39 = vmax.f32 %v629_v1, %v630_v18 }
  0xf2   : > { %v576_v58 = vsel %vm558_vm3, %v541_v50, 0.0  ;;  %v655_v11 = vmax.f32 %v653_v40, %v654_v56  ;;  %v661_v19 = vmax.f32 %v659_v49, %v660_v2  ;;  %v694_v50 = vmul.f32 %v1400_v37, %v605_v22 }
  0xf3   : > { %v577_v59 = vsel %vm1371_vm2, %v542_v51, 0.0  ;;  %v496_v60 = vpop.f32.mrf.mxu2  ;;  %v664_v63 = vsel %vm585_vm4, %v576_v58, -inf  ;;  %v624_v47 = vmax.f32 %v622_v6, %v623_v23  ;;  %v696_v28 = vmul.f32 %v1400_v37, %v618_v33 }
  0xf4   : > { %v671_v0 = vrot.slane %v577_v59, 4  ;;  %v665_v3 = vrot.slane %v664_v63, 4  ;;  %v497_v4 = vadd.f32 %v496_v60, %v1368_v42  ;;  %v643_v42 = vrot.slane %v642_v7, 1 }
  0xf5   : > { %v656_v26 = vrot.slane %v655_v11, 1  ;;  %v662_v40 = vrot.slane %v661_v19, 1  ;;  %v650_v54 = vmax.f32 %v648_v16, %v649_v34  ;;  %v695_v45 = vmul.f32 %v1398_v32, %v611_v30 }
  0xf6   : > { %v672_v9 = vmax.f32 %v577_v59, %v671_v0  ;;  %v666_v43 = vmax.f32 %v664_v63, %v665_v3  ;;  %v526_v12 = vadd.f32 %v525_v8, %v497_v4  ;;  %v644_v48 = vmax.f32 %v642_v7, %v643_v42 }
  0xf7   : > { %v657_v51 = vmax.f32 %v655_v11, %v656_v26  ;;  %v698_v56 = vmul.f32 %v1400_v37, %v631_v39  ;;  %v663_v58 = vmax.f32 %v661_v19, %v662_v40  ;;  %v723_v60 = vrot.slane %v693_v46, 7 }
  0xf8   : > { %v673_v17 = vrot.slane %v672_v9, 2  ;;  %v667_v20 = vrot.slane %v666_v43, 2  ;;  %v543_v21 = vmax.f32 %v526_v12, 0.0  ;;  %v697_v61 = vmul.f32 %v1398_v32, %v624_v47 }
  0xf9   : > { %v700_v62 = vmul.f32 %v1400_v37, %v644_v48  ;;  %v744_v0 = vrot.slane %v694_v50, 7  ;;  %v699_v13 = vmul.f32 %v1398_v32, %v637_v36  ;;  %v702_v1 = vmul.f32 %v1400_v37, %v657_v51 }
  0xfa   : > { %v674_v24 = vmax.f32 %v672_v9, %v673_v17  ;;  %v668_v27 = vmax.f32 %v666_v43, %v667_v20  ;;  %v578_v29 = vsel %vm558_vm3, %v543_v21, 0.0  ;;  %v692_v2 = vmul.f32 %v1400_v37, %v592_v53 }
  0xfb   : > { %v677_v35 = vsel %vm585_vm4, %v578_v29, -inf  ;;  %v746_v3 = vrot.slane %v696_v28, 6  ;;  %v701_v4 = vmul.f32 %v1398_v32, %v650_v54  ;;  %v726_v6 = vrot.slane %v695_v45, 6 }
  0xfc   : > { %v669_v41 = vrot.slane %v668_v27, 1  ;;  %v678_v44 = vrot.slane %v677_v35, 4  ;;  %v675_v49 = vrot.slane %v674_v24, 1  ;;  %v748_v7 = vrot.slane %v698_v56, 5 }
  0xfd   : > { %v703_v9 = vmul.f32 %v1398_v32, %v663_v58  ;;  %v729_v10 = vrot.slane %v697_v61, 5  ;;  %v725_v43 = vsel %vm724_vm5, %v723_v60, %v1415_v57  ;;  %v750_v12 = vrot.slane %v700_v62, 4 }
  0xfe   : > { %v679_v52 = vmax.f32 %v677_v35, %v678_v44  ;;  %v670_v55 = vmax.f32 %v668_v27, %v669_v41  ;;  %v676_v63 = vmax.f32 %v674_v24, %v675_v49  ;;  %v732_v14 = vrot.slane %v699_v13, 4 }
  0xff   : > { %v745_v16 = vsel %vm724_vm5, %v744_v0, %v692_v2  ;;  %v752_v17 = vrot.slane %v702_v1, 3  ;;  %v735_v18 = vrot.slane %v701_v4, 3  ;;  %v728_v22 = vsel %vm727_vm6, %v726_v6, %v725_v43 }
 0x100   : > { %v680_v59 = vrot.slane %v679_v52, 2  ;;  %v704_v5 = vmul.f32 %v1400_v37, %v670_v55  ;;  %v705_v11 = vmul.f32 %v1398_v32, %v676_v63  ;;  %v747_v19 = vsel %vm727_vm6, %v746_v3, %v745_v16 }
 0x101   : > { %v738_v23 = vrot.slane %v703_v9, 2  ;;  %v749_v32 = vsel %vm730_vm7, %v748_v7, %v747_v19  ;;  %v731_v57 = vsel %vm730_vm7, %v729_v10, %v728_v22  ;;  %v764_v40 = vstv %s684_s10 }
 0x102   : > { %v681_v38 = vmax.f32 %v679_v52, %v680_v59  ;;  %v754_v20 = vrot.slane %v704_v5, 2  ;;  %v741_v42 = vrot.slane %v705_v11, 1  ;;  %v751_v24 = vsel %vm733_vm8, %v750_v12, %v749_v32 }
 0x103   : > { %v734_v25 = vsel %vm733_vm8, %v732_v14, %v731_v57  ;;  %v753_v26 = vsel %vm736_vm9, %v752_v17, %v751_v24 }
 0x104   : > { %v682_v8 = vrot.slane %v681_v38, 1  ;;  %v737_v29 = vsel %vm736_vm9, %v735_v18, %v734_v25  ;;  %v755_v30 = vsel %vm739_vm10, %v754_v20, %v753_v26 }
 0x105   : > { %v740_v33 = vsel %vm739_vm10, %v738_v23, %v737_v29 }
 0x106   : > { %v683_v15 = vmax.f32 %v681_v38, %v682_v8  ;;  %v743_v34 = vsel %vm742_vm11, %v741_v42, %v740_v33 }
 0x108   : > { %v706_v21 = vmul.f32 %v1400_v37, %v683_v15 }
 0x10a   : > { %v756_v27 = vrot.slane %v706_v21, 1 }
 0x10c   : > { %v757_v37 = vsel %vm742_vm11, %v756_v27, %v755_v30 }
 0x10d   : > { %v760_v35 = vsel %vm585_vm4, %v757_v37, 0.0 }
 0x10e   : > { %v761_v39 = vadd.f32 %v760_v35, %v743_v34 }
 0x110   : > { %762 = vadd.xlane.f32.xlu0 %v761_v39 }
 0x183   : > { %v763_v41 = vpop.xlane.xlu0 %762 }
 0x184   : > { %v765_v44 = vadd.f32 %v764_v40, %v763_v41 }
 0x186   : > { %v985_v46 = vmul.f32 -1.442695, %v765_v44 }
 0x188   : > { %1057 = vpow2.f32 %v985_v46 }
 0x18e   : > { %v1058_v47 = vpop.eup %1057 }
 0x18f   : > { %v769_v48 = vadd.f32 1.0, %v1058_v47 }
 0x191   : > { %1059 = vrcp.f32 %v769_v48  ;;  %v781_v51 = vand.u32 2147483648, %v769_v48  ;;  %v779_v53 = vand.u32 2147483647, %v769_v48  ;;  %vm775_vm13 = vweird.f32 %v769_v48 }
 0x193   : > { %v782_v54 = vor.u32 1.1754944e-38, %v781_v51  ;;  %vm780_vm15 = vcmp.eq.f32.partialorder %v779_v53, 8.507059e+37 }
 0x197   : > { %v1060_v49 = vpop.eup %1059 }
 0x198   : > { %v771_v50 = vmul.f32 %v1060_v49, %v769_v48  ;;  %vm776_vm12 = vweird.f32 %v1060_v49 }
 0x199   : > { %vm777_vm14 = vmor %vm775_vm13, %vm776_vm12 }
 0x19a   : > { %v772_v36 = vsub.f32 1.0, %v771_v50 }
 0x19c   : > { %v773_v52 = vmul.f32 %v1060_v49, %v772_v36 }
 0x19e   : > { %v774_v28 = vadd.f32 %v1060_v49, %v773_v52 }
 0x1a0   : > { %v778_v55 = vsel %vm777_vm14, %v1060_v49, %v774_v28 }
 0x1a1   : > { %v783_v45 = vsel %vm780_vm15, %v782_v54, %v778_v55 }
 0x1a2   : > { %v786_v56 = vperm.slane %v783_v45, %v1362_v31 }
 0x1a4   : > { %789 = vst.msk [vmem:[%s220_s16] sm:$0x1] %vm788_vm0, %v786_v56 }
 0x1a5   : > { %1088 = shalt.err (!%p1085_p3)
}
 0x1a6   : > { %1017 = dma.vmem_to_hbm [thread:$0]  (%p1197_p5), %s802_s17, 16, %s804_s18, %s791_s19  }
 0x1a7 PF: > { %p1023_p4 = scmp.ge.s32.totalorder %s1123_s23, 2  ;;  %s815_s7 = sand.u32 1, %s1111_s20  }
 0x1a8   : > { %s816_s9 = scalar_lea.sflag [#allocation4], %s815_s7 }
 0x1a9   : > { %p1020_p7 = pnand %p1023_p4, %p1201_p6 }
 0x1ab   : > { %p1021_p8 = pneg %p1020_p7 }
 0x1ad   : > { %1106 = dma.done.wait (%p1021_p8), %s816_s9, 16  }
 0x1ae   : > { %1108 = vsyncadd (%p1021_p8), %s816_s9, 4294967280  ;;  %p16_p9 = scmp.ge.s32.totalorder %s1184_s25, 4   ;;  %s1515_s20 = smov %s1115_s21 }
 0x1af   : > { %s1516_s21 = smov %s1119_s22  ;;  %s1517_s22 = smov %s1195_s28 }
 0x1b0   : > { %s1518_s23 = smov %s1184_s25  ;;  %18 = sbr.rel (!%p16_p9) target bundleno = 5 (0x5), region = 75 }
 0x1b5   :  { %821 = vsyncpa [#allocation4], 1 }
 0x1b6   :  { %823 = vsyncpa [#allocation4 + $0x1], 1 }

</bundles_post_ra>
